<compile_context>
chip_gen: v6e
topology: v6e:2x2x1
jax: 0.10.0
libtpu: 0.0.40
codegen_flags: <defaults>
</compile_context>

<pallas_src>
import functools
import math

import jax
import jax.numpy as jnp
from jax import lax
from jax.experimental import pallas as pl
from jax.experimental.pallas import tpu as pltpu


def _layernorm(x, g, b, eps=1e-6):
    # Annotated-Transformer LayerNorm: unbiased std (torch .std default),
    # eps added to std (not variance).  Stats in f32; reciprocal on the EUP
    # but full precision (it feeds both residual branches).
    d = x.shape[-1]
    mean = jnp.mean(x, axis=-1, keepdims=True)
    diff = x - mean
    var = jnp.sum(diff * diff, axis=-1, keepdims=True) * (1.0 / (d - 1))
    std = jnp.sqrt(var)
    return g * diff * pl.reciprocal(std + eps, approx=False) + b


def encoder_layer_kernel(x_ref, mask_ref,
                         ln1_g_ref, ln1_b_ref,
                         wqT_ref, bqT_ref,
                         wkT_ref, bkT_ref,
                         wvT_ref, bvT_ref,
                         woT_ref, boT_ref,
                         ln2_g_ref, ln2_b_ref,
                         w1_ref, b1_ref, w2_ref, b2_ref,
                         out_ref, *, num_heads):
    Bb, S, D = x_ref.shape
    N = Bb * S
    H = num_heads
    d_k = D // H
    bf16 = jnp.bfloat16
    f32 = jnp.float32

    # (Bb, S, D) -> (N, D): leading-dim merge (layout-free); f32 residual stream.
    x = x_ref[...].astype(f32).reshape(N, D)

    # ---- additive attention bias, built once and shared by all heads --------
    # bias[k] (or bias[q,k]) is ADDED to the scores: 0 where attention is
    # allowed, ~-1e9 for masked keys inside a packed batch row (matches
    # masked_fill(-1e9) up to f32 exp underflow), -1e30 across packed rows so
    # cross-batch keys never win even when a row's own keys are all masked.
    key_ok = mask_ref[...] != 0.0                                  # (1, N)
    if Bb == 1:
        bias = jnp.where(key_ok, f32(0.0), f32(-1e9))              # (1, N)
    else:
        qb = lax.broadcasted_iota(jnp.int32, (N, N), 0) // S
        kb = lax.broadcasted_iota(jnp.int32, (N, N), 1) // S
        same_b = qb == kb                                          # block-diagonal
        bias = jnp.where(same_b,
                         jnp.where(key_ok, f32(0.0), f32(-1e9)),
                         f32(-1e30))                               # (N, N)

    # ---- sublayer 0: x + self_attn(LN(x), mask) ------------------------------
    xn = _layernorm(x, ln1_g_ref[...], ln1_b_ref[...])             # (N, D) f32
    xnT_bf = xn.astype(bf16).T                                     # (D, N) bf16 transpose

    # Q / K / V all via identical full-width transposed projections
    # (W^T @ xn^T) followed by a free leading-dim head split -> (H, d_k, N).
    # The 1/sqrt(d_k) scale is folded into wqT / bqT on the host.
    def proj_T(wT_ref, bT_ref):
        y = jnp.dot(wT_ref[...], xnT_bf, preferred_element_type=f32) + bT_ref[...]
        return y.reshape(H, d_k, N)

    qT = proj_T(wqT_ref, bqT_ref)                                  # (H, d_k, N)
    kT = proj_T(wkT_ref, bkT_ref)                                  # (H, d_k, N)
    vT = proj_T(wvT_ref, bvT_ref)                                  # (H, d_k, N)

    # scores for all heads in one LHS-transposed batched contraction over d_k:
    # scores[h, q, k] = sum_d qT[h, d, q] * kT[h, d, k]   -> (H, N, N) f32.
    scores = jnp.einsum("hdq,hdk->hqk",
                        qT.astype(bf16), kT.astype(bf16),
                        preferred_element_type=f32)
    scores = scores + bias                                         # broadcast over heads

    # NOTE: for long S the (H, N, N) scores should be flash-tiled over a KV
    # grid axis with online softmax; unnecessary at these sizes.
    m = jnp.max(scores, axis=-1, keepdims=True)
    e = jnp.exp(scores - m)
    p = e * pl.reciprocal(jnp.sum(e, axis=-1, keepdims=True), approx=True)

    # context for all heads, produced directly in concat-transposed form:
    # ctxT[h, d, q] = sum_k V_h[k, d] * P_h[q, k]  -> reshape to (D, N).
    ctxT = jnp.einsum("hdk,hqk->hdq",
                      vT.astype(bf16), p.astype(bf16),
                      preferred_element_type=f32)                  # (H, d_k, N)
    ctxT = ctxT.reshape(D, N).astype(bf16)                         # heads concat on rows

    attnT = jnp.dot(woT_ref[...], ctxT, preferred_element_type=f32) + boT_ref[...]
    # TODO(synk): dropout treated as identity (eval mode / p=0) — no clean
    # RNG-exact equivalent of torch dropout masks.
    x1 = x + attnT.astype(bf16).T                                  # bf16 transpose, f32 add

    # ---- sublayer 1: x1 + FFN(LN(x1)) ----------------------------------------
    x1n = _layernorm(x1, ln2_g_ref[...], ln2_b_ref[...]).astype(bf16)
    h1 = jnp.dot(x1n, w1_ref[...], preferred_element_type=f32) + b1_ref[...]
    h1 = jnp.maximum(h1, 0.0).astype(bf16)
    ff = jnp.dot(h1, w2_ref[...], preferred_element_type=f32) + b2_ref[...]

    # NOTE: with D < 128 this store's last dim is not lane-dense; a flattened
    # lane-dense out layout would need a minor-dim reshape in-kernel, left out
    # on purpose (realistic D >= 128 is already lane-dense).
    out_ref[...] = (x1 + ff).reshape(Bb, S, D).astype(out_ref.dtype)


def prepare_params(params, *, num_heads):
    """One-time host-side weight/layout prep — call at parameter-load time.

    Q/K/V/O are stored transposed (used as W^T @ xn^T inside the kernel);
    the 1/sqrt(d_k) attention scale is folded into the Q weights/bias;
    matmul operands are pre-cast to bf16 (f32 accumulation in-kernel).
    """
    D = params["wq"].shape[0]
    assert D % num_heads == 0
    d_k = D // num_heads
    scale = 1.0 / math.sqrt(d_k)
    f32, bf16 = jnp.float32, jnp.bfloat16
    return {
        "wqT": (params["wq"] * scale).T.astype(bf16),
        "bqT": (params["bq"] * scale).T.astype(f32),
        "wkT": params["wk"].T.astype(bf16), "bkT": params["bk"].T.astype(f32),
        "wvT": params["wv"].T.astype(bf16), "bvT": params["bv"].T.astype(f32),
        "woT": params["wo"].T.astype(bf16), "boT": params["bo"].T.astype(f32),
        "w1": params["w1"].astype(bf16), "b1": params["b1"].astype(f32),
        "w2": params["w2"].astype(bf16), "b2": params["b2"].astype(f32),
        "ln1_g": params["ln1_g"].astype(f32), "ln1_b": params["ln1_b"].astype(f32),
        "ln2_g": params["ln2_g"].astype(f32), "ln2_b": params["ln2_b"].astype(f32),
    }


@functools.partial(jax.jit, static_argnames=("num_heads",))
def encoder_layer(x, mask, prep, *, num_heads):
    B, S, D = x.shape
    assert D % num_heads == 0
    d_ff = prep["w1"].shape[1]

    # ---- batch packing --------------------------------------------------
    # Pack several batch rows per grid step so the matmul N dimension / lanes
    # are better filled (target 256 tokens: fills the 256-wide MXU on v6e/v7x),
    # but keep nb >= 2 whenever B >= 2 so (a) v7x's second TensorCore gets work
    # and (b) input/output DMAs pipeline across grid steps.  Attention between
    # packed rows is disabled with a block-diagonal bias built in the kernel.
    PACK_TOKENS = 256
    Bblk = 1
    for cand in range(1, B + 1):
        if B % cand != 0:
            continue
        nb_cand = B // cand
        if cand * S <= max(PACK_TOKENS, S) and (nb_cand >= 2 or B == 1):
            Bblk = cand
    nb = B // Bblk
    N = Bblk * S

    # Key-padding mask, one lane-dense row per packed block.
    mask_blocks = mask.astype(jnp.float32).reshape(nb, 1, N)

    def full(shape):
        # Grid-invariant weights/biases.  NOTE: for large D / d_ff these should
        # be single-buffered (pipeline_mode=pl.Buffered(1)) to halve weight
        # VMEM residency; tiny here, so left at the default.
        n = len(shape)
        return pl.BlockSpec(shape, lambda i, _n=n: (0,) * _n)

    in_specs = [
        pl.BlockSpec((Bblk, S, D), lambda i: (i, 0, 0)),      # x block
        pl.BlockSpec((None, 1, N), lambda i: (i, 0, 0)),      # mask row for block
        full((1, D)), full((1, D)),                           # ln1 g/b
        full((D, D)), full((D, 1)),                           # Q^T (scale folded)
        full((D, D)), full((D, 1)),                           # K^T
        full((D, D)), full((D, 1)),                           # V^T
        full((D, D)), full((D, 1)),                           # O^T
        full((1, D)), full((1, D)),                           # ln2 g/b
        full((D, d_ff)), full((1, d_ff)),                     # W1, b1
        full((d_ff, D)), full((1, D)),                        # W2, b2
    ]

    kernel = functools.partial(encoder_layer_kernel, num_heads=num_heads)
    return pl.pallas_call(
        kernel,
        out_shape=jax.ShapeDtypeStruct((B, S, D), x.dtype),
        grid=(nb,),
        in_specs=in_specs,
        out_specs=pl.BlockSpec((Bblk, S, D), lambda i: (i, 0, 0)),
        compiler_params=pltpu.CompilerParams(
            dimension_semantics=("parallel",),
            vmem_limit_bytes=32 * 1024 * 1024,
        ),
    )(x, mask_blocks,
      prep["ln1_g"], prep["ln1_b"],
      prep["wqT"], prep["bqT"],
      prep["wkT"], prep["bkT"],
      prep["wvT"], prep["bvT"],
      prep["woT"], prep["boT"],
      prep["ln2_g"], prep["ln2_b"],
      prep["w1"], prep["b1"], prep["w2"], prep["b2"])


# ------------------------- pure-JAX reference (f32) --------------------------
def reference_forward(x, mask, params, *, num_heads):
    def ln(v, g, b, eps=1e-6):
        mean = v.mean(-1, keepdims=True)
        var = ((v - mean) ** 2).sum(-1, keepdims=True) / (v.shape[-1] - 1)
        return g * (v - mean) / (jnp.sqrt(var) + eps) + b

    B, S, D = x.shape
    d_k = D // num_heads
    xn = ln(x, params["ln1_g"], params["ln1_b"])
    q = xn @ params["wq"] + params["bq"]
    k = xn @ params["wk"] + params["bk"]
    v = xn @ params["wv"] + params["bv"]

    def split(t):
        return t.reshape(B, S, num_heads, d_k).transpose(0, 2, 1, 3)

    qh, kh, vh = split(q), split(k), split(v)
    scores = jnp.einsum("bhqd,bhkd->bhqk", qh, kh) / math.sqrt(d_k)
    scores = jnp.where(mask[:, None, :, :] == 0.0, -1e9, scores)
    p = jax.nn.softmax(scores, axis=-1)
    ctx = jnp.einsum("bhqk,bhkd->bhqd", p, vh)
    ctx = ctx.transpose(0, 2, 1, 3).reshape(B, S, D)
    attn = ctx @ params["wo"] + params["bo"]
    x1 = x + attn
    x1n = ln(x1, params["ln2_g"], params["ln2_b"])
    h1 = jnp.maximum(x1n @ params["w1"] + params["b1"], 0.0)
    return x1 + (h1 @ params["w2"] + params["b2"])


def _linear_init(key, fan_in, fan_out):
    # matches torch nn.Linear default init: U(-1/sqrt(fan_in), 1/sqrt(fan_in))
    bound = 1.0 / math.sqrt(fan_in)
    kw, kb = jax.random.split(key)
    w = jax.random.uniform(kw, (fan_in, fan_out), jnp.float32, -bound, bound)
    b = jax.random.uniform(kb, (1, fan_out), jnp.float32, -bound, bound)
    return w, b


if __name__ == "__main__":
    B, S, D, H, DFF = 2, 8, 32, 4, 64   # batch, seq, d_model(size), heads, d_ff

    key = jax.random.PRNGKey(0)
    keys = jax.random.split(key, 8)

    x = jax.random.normal(keys[0], (B, S, D), jnp.float32)
    # padding-style mask: batch 1 has its last 2 key positions masked out
    mask = jnp.ones((B, 1, S), jnp.float32).at[1, 0, 6:].set(0.0)

    params = {
        "ln1_g": jnp.ones((1, D), jnp.float32),
        "ln1_b": jnp.zeros((1, D), jnp.float32),
        "ln2_g": jnp.ones((1, D), jnp.float32),
        "ln2_b": jnp.zeros((1, D), jnp.float32),
    }
    params["wq"], params["bq"] = _linear_init(keys[1], D, D)
    params["wk"], params["bk"] = _linear_init(keys[2], D, D)
    params["wv"], params["bv"] = _linear_init(keys[3], D, D)
    params["wo"], params["bo"] = _linear_init(keys[4], D, D)
    params["w1"], params["b1"] = _linear_init(keys[5], D, DFF)
    params["w2"], params["b2"] = _linear_init(keys[6], DFF, D)

    # Host-side weight layout prep done ONCE (hoisted out of the per-call path).
    prep = jax.tree.map(jnp.asarray, prepare_params(params, num_heads=H))

    out = encoder_layer(x, mask, prep, num_heads=H)
    jax.block_until_ready(out)
    assert out.shape == (B, S, D)

    ref = reference_forward(x, mask, params, num_heads=H)
    max_err = float(jnp.max(jnp.abs(out - ref)))
    # bf16 matmuls + approx softmax reciprocal -> small deviation from f32 ref.
    assert max_err < 0.1, f"kernel deviates from reference: max abs err {max_err}"

    print("KERNEL_OK")
</pallas_src>

<mosaic_0001>
module attributes {stable_mosaic.version = 11 : i64} {
  func.func @encoder_layer_kernel(%arg0: i32, %arg1: memref<1x8x32xf32, #tpu.memory_space<vmem>>, %arg2: memref<1x1x8xf32, #tpu.memory_space<vmem>>, %arg3: memref<1x32xf32, #tpu.memory_space<vmem>>, %arg4: memref<1x32xf32, #tpu.memory_space<vmem>>, %arg5: memref<32x32xbf16, #tpu.memory_space<vmem>>, %arg6: memref<32x1xf32, #tpu.memory_space<vmem>>, %arg7: memref<32x32xbf16, #tpu.memory_space<vmem>>, %arg8: memref<32x1xf32, #tpu.memory_space<vmem>>, %arg9: memref<32x32xbf16, #tpu.memory_space<vmem>>, %arg10: memref<32x1xf32, #tpu.memory_space<vmem>>, %arg11: memref<32x32xbf16, #tpu.memory_space<vmem>>, %arg12: memref<32x1xf32, #tpu.memory_space<vmem>>, %arg13: memref<1x32xf32, #tpu.memory_space<vmem>>, %arg14: memref<1x32xf32, #tpu.memory_space<vmem>>, %arg15: memref<32x64xbf16, #tpu.memory_space<vmem>>, %arg16: memref<1x64xf32, #tpu.memory_space<vmem>>, %arg17: memref<64x32xbf16, #tpu.memory_space<vmem>>, %arg18: memref<1x32xf32, #tpu.memory_space<vmem>>, %arg19: memref<1x8x32xf32, #tpu.memory_space<vmem>>) attributes {dimension_semantics = [#tpu.dimension_semantics<parallel>], iteration_bounds = array<i64: 2>, scalar_prefetch = 0 : i64, scratch_operands = 0 : i64, tpu.core_type = #tpu.core_type<tc>, window_params = [{transform_indices = @transform_0, window_bounds = array<i64: 1, 8, 32>}, {transform_indices = @transform_1, window_bounds = array<i64: 1, 1, 8>}, {pipeline_mode = #tpu.pipeline_mode<synchronous>, transform_indices = @transform_2, window_bounds = array<i64: 1, 32>}, {pipeline_mode = #tpu.pipeline_mode<synchronous>, transform_indices = @transform_3, window_bounds = array<i64: 1, 32>}, {pipeline_mode = #tpu.pipeline_mode<synchronous>, transform_indices = @transform_4, window_bounds = array<i64: 32, 32>}, {pipeline_mode = #tpu.pipeline_mode<synchronous>, transform_indices = @transform_5, window_bounds = array<i64: 32, 1>}, {pipeline_mode = #tpu.pipeline_mode<synchronous>, transform_indices = @transform_6, window_bounds = array<i64: 32, 32>}, {pipeline_mode = #tpu.pipeline_mode<synchronous>, transform_indices = @transform_7, window_bounds = array<i64: 32, 1>}, {pipeline_mode = #tpu.pipeline_mode<synchronous>, transform_indices = @transform_8, window_bounds = array<i64: 32, 32>}, {pipeline_mode = #tpu.pipeline_mode<synchronous>, transform_indices = @transform_9, window_bounds = array<i64: 32, 1>}, {pipeline_mode = #tpu.pipeline_mode<synchronous>, transform_indices = @transform_10, window_bounds = array<i64: 32, 32>}, {pipeline_mode = #tpu.pipeline_mode<synchronous>, transform_indices = @transform_11, window_bounds = array<i64: 32, 1>}, {pipeline_mode = #tpu.pipeline_mode<synchronous>, transform_indices = @transform_12, window_bounds = array<i64: 1, 32>}, {pipeline_mode = #tpu.pipeline_mode<synchronous>, transform_indices = @transform_13, window_bounds = array<i64: 1, 32>}, {pipeline_mode = #tpu.pipeline_mode<synchronous>, transform_indices = @transform_14, window_bounds = array<i64: 32, 64>}, {pipeline_mode = #tpu.pipeline_mode<synchronous>, transform_indices = @transform_15, window_bounds = array<i64: 1, 64>}, {pipeline_mode = #tpu.pipeline_mode<synchronous>, transform_indices = @transform_16, window_bounds = array<i64: 64, 32>}, {pipeline_mode = #tpu.pipeline_mode<synchronous>, transform_indices = @transform_17, window_bounds = array<i64: 1, 32>}, {transform_indices = @transform_18, window_bounds = array<i64: 1, 8, 32>}]} {
    %c0 = arith.constant 0 : index
    %c0_0 = arith.constant 0 : index
    %c0_1 = arith.constant 0 : index
    %0 = vector.load %arg1[%c0, %c0_0, %c0_1] : memref<1x8x32xf32, #tpu.memory_space<vmem>>, vector<1x8x32xf32>
    %1 = vector.shape_cast %0 : vector<1x8x32xf32> to vector<8x32xf32>
    %c0_2 = arith.constant 0 : index
    %c0_3 = arith.constant 0 : index
    %c0_4 = arith.constant 0 : index
    %2 = vector.load %arg2[%c0_2, %c0_3, %c0_4] : memref<1x1x8xf32, #tpu.memory_space<vmem>>, vector<1x1x8xf32>
    %3 = vector.shape_cast %2 : vector<1x1x8xf32> to vector<1x8xf32>
    %cst = arith.constant 0.000000e+00 : f32
    %4 = vector.broadcast %cst : f32 to vector<1x8xf32>
    %5 = arith.cmpf one, %3, %4 : vector<1x8xf32>
    %cst_5 = arith.constant 0.000000e+00 : f32
    %cst_6 = arith.constant -1.000000e+09 : f32
    %6 = vector.broadcast %cst_5 : f32 to vector<1x8xf32>
    %7 = vector.broadcast %cst_6 : f32 to vector<1x8xf32>
    %8 = arith.select %5, %6, %7 : vector<1x8xi1>, vector<1x8xf32>
    %c0_7 = arith.constant 0 : index
    %c0_8 = arith.constant 0 : index
    %9 = vector.load %arg3[%c0_7, %c0_8] : memref<1x32xf32, #tpu.memory_space<vmem>>, vector<1x32xf32>
    %c0_9 = arith.constant 0 : index
    %c0_10 = arith.constant 0 : index
    %10 = vector.load %arg4[%c0_9, %c0_10] : memref<1x32xf32, #tpu.memory_space<vmem>>, vector<1x32xf32>
    %cst_11 = arith.constant dense<0.000000e+00> : vector<8xf32>
    %11 = vector.multi_reduction <add>, %1, %cst_11 [1] : vector<8x32xf32> to vector<8xf32>
    %12 = vector.shape_cast %11 : vector<8xf32> to vector<8x1xf32>
    %cst_12 = arith.constant 3.200000e+01 : f32
    %13 = vector.broadcast %cst_12 : f32 to vector<8x1xf32>
    %14 = arith.divf %12, %13 : vector<8x1xf32>
    %15 = vector.broadcast %14 : vector<8x1xf32> to vector<8x32xf32>
    %16 = arith.subf %1, %15 : vector<8x32xf32>
    %17 = arith.mulf %16, %16 : vector<8x32xf32>
    %cst_13 = arith.constant dense<0.000000e+00> : vector<8xf32>
    %18 = vector.multi_reduction <add>, %17, %cst_13 [1] : vector<8x32xf32> to vector<8xf32>
    %19 = vector.shape_cast %18 : vector<8xf32> to vector<8x1xf32>
    %cst_14 = arith.constant 0.0322580636 : f32
    %20 = vector.broadcast %cst_14 : f32 to vector<8x1xf32>
    %21 = arith.mulf %19, %20 : vector<8x1xf32>
    %22 = math.sqrt %21 : vector<8x1xf32>
    %23 = vector.broadcast %9 : vector<1x32xf32> to vector<8x32xf32>
    %24 = arith.mulf %23, %16 : vector<8x32xf32>
    %cst_15 = arith.constant 9.99999997E-7 : f32
    %25 = vector.broadcast %cst_15 : f32 to vector<8x1xf32>
    %26 = arith.addf %22, %25 : vector<8x1xf32>
    %27 = tpu.reciprocal %26 : vector<8x1xf32> -> vector<8x1xf32>
    %28 = vector.broadcast %27 : vector<8x1xf32> to vector<8x32xf32>
    %29 = arith.mulf %24, %28 : vector<8x32xf32>
    %30 = vector.broadcast %10 : vector<1x32xf32> to vector<8x32xf32>
    %31 = arith.addf %29, %30 : vector<8x32xf32>
    %32 = arith.truncf %31 : vector<8x32xf32> to vector<8x32xbf16>
    %33 = tpu.transpose %32, [1, 0] : vector<8x32xbf16> -> vector<32x8xbf16>
    %c0_16 = arith.constant 0 : index
    %c0_17 = arith.constant 0 : index
    %34 = vector.load %arg5[%c0_16, %c0_17] : memref<32x32xbf16, #tpu.memory_space<vmem>>, vector<32x32xbf16>
    %cst_18 = arith.constant dense<0.000000e+00> : vector<32x8xf32>
    %35 = tpu.matmul %34, %33, %cst_18 {dimension_numbers = #tpu.dot_dimension_numbers<[1], [0], [0], [1], [0, 0, 1, 1], [], []>} : vector<32x32xbf16>, vector<32x8xbf16>, vector<32x8xf32> -> vector<32x8xf32>
    %c0_19 = arith.constant 0 : index
    %c0_20 = arith.constant 0 : index
    %36 = vector.load %arg6[%c0_19, %c0_20] : memref<32x1xf32, #tpu.memory_space<vmem>>, vector<32x1xf32>
    %37 = vector.broadcast %36 : vector<32x1xf32> to vector<32x8xf32>
    %38 = arith.addf %35, %37 : vector<32x8xf32>
    %39 = vector.shape_cast %38 : vector<32x8xf32> to vector<4x8x8xf32>
    %c0_21 = arith.constant 0 : index
    %c0_22 = arith.constant 0 : index
    %40 = vector.load %arg7[%c0_21, %c0_22] : memref<32x32xbf16, #tpu.memory_space<vmem>>, vector<32x32xbf16>
    %cst_23 = arith.constant dense<0.000000e+00> : vector<32x8xf32>
    %41 = tpu.matmul %40, %33, %cst_23 {dimension_numbers = #tpu.dot_dimension_numbers<[1], [0], [0], [1], [0, 0, 1, 1], [], []>} : vector<32x32xbf16>, vector<32x8xbf16>, vector<32x8xf32> -> vector<32x8xf32>
    %c0_24 = arith.constant 0 : index
    %c0_25 = arith.constant 0 : index
    %42 = vector.load %arg8[%c0_24, %c0_25] : memref<32x1xf32, #tpu.memory_space<vmem>>, vector<32x1xf32>
    %43 = vector.broadcast %42 : vector<32x1xf32> to vector<32x8xf32>
    %44 = arith.addf %41, %43 : vector<32x8xf32>
    %45 = vector.shape_cast %44 : vector<32x8xf32> to vector<4x8x8xf32>
    %c0_26 = arith.constant 0 : index
    %c0_27 = arith.constant 0 : index
    %46 = vector.load %arg9[%c0_26, %c0_27] : memref<32x32xbf16, #tpu.memory_space<vmem>>, vector<32x32xbf16>
    %cst_28 = arith.constant dense<0.000000e+00> : vector<32x8xf32>
    %47 = tpu.matmul %46, %33, %cst_28 {dimension_numbers = #tpu.dot_dimension_numbers<[1], [0], [0], [1], [0, 0, 1, 1], [], []>} : vector<32x32xbf16>, vector<32x8xbf16>, vector<32x8xf32> -> vector<32x8xf32>
    %c0_29 = arith.constant 0 : index
    %c0_30 = arith.constant 0 : index
    %48 = vector.load %arg10[%c0_29, %c0_30] : memref<32x1xf32, #tpu.memory_space<vmem>>, vector<32x1xf32>
    %49 = vector.broadcast %48 : vector<32x1xf32> to vector<32x8xf32>
    %50 = arith.addf %47, %49 : vector<32x8xf32>
    %51 = vector.shape_cast %50 : vector<32x8xf32> to vector<4x8x8xf32>
    %52 = arith.truncf %39 : vector<4x8x8xf32> to vector<4x8x8xbf16>
    %53 = arith.truncf %45 : vector<4x8x8xf32> to vector<4x8x8xbf16>
    "tpu.trace_start"() <{level = 10 : i32, message = "hdq,hdk->hqk"}> : () -> ()
    %cst_31 = arith.constant dense<0.000000e+00> : vector<4x8x8xf32>
    %54 = tpu.matmul %52, %53, %cst_31 {dimension_numbers = #tpu.dot_dimension_numbers<[1], [1], [2], [2], [0, 0, 0, 2, 1, 2], [0], [0]>} : vector<4x8x8xbf16>, vector<4x8x8xbf16>, vector<4x8x8xf32> -> vector<4x8x8xf32>
    "tpu.trace_stop"() : () -> ()
    %55 = vector.shape_cast %8 : vector<1x8xf32> to vector<1x1x8xf32>
    %56 = vector.broadcast %55 : vector<1x1x8xf32> to vector<4x8x8xf32>
    %57 = arith.addf %54, %56 : vector<4x8x8xf32>
    %cst_32 = arith.constant dense<0xFF800000> : vector<4x8xf32>
    %58 = vector.multi_reduction <maximumf>, %57, %cst_32 [2] : vector<4x8x8xf32> to vector<4x8xf32>
    %59 = vector.shape_cast %58 : vector<4x8xf32> to vector<4x8x1xf32>
    %60 = vector.broadcast %59 : vector<4x8x1xf32> to vector<4x8x8xf32>
    %61 = arith.subf %57, %60 : vector<4x8x8xf32>
    %62 = math.exp %61 : vector<4x8x8xf32>
    %cst_33 = arith.constant dense<0.000000e+00> : vector<4x8xf32>
    %63 = vector.multi_reduction <add>, %62, %cst_33 [2] : vector<4x8x8xf32> to vector<4x8xf32>
    %64 = vector.shape_cast %63 : vector<4x8xf32> to vector<4x8x1xf32>
    %65 = tpu.reciprocal %64 {approx = true} : vector<4x8x1xf32> -> vector<4x8x1xf32>
    %66 = vector.broadcast %65 : vector<4x8x1xf32> to vector<4x8x8xf32>
    %67 = arith.mulf %62, %66 : vector<4x8x8xf32>
    %68 = arith.truncf %51 : vector<4x8x8xf32> to vector<4x8x8xbf16>
    %69 = arith.truncf %67 : vector<4x8x8xf32> to vector<4x8x8xbf16>
    "tpu.trace_start"() <{level = 10 : i32, message = "hdk,hqk->hdq"}> : () -> ()
    %cst_34 = arith.constant dense<0.000000e+00> : vector<4x8x8xf32>
    %70 = tpu.matmul %68, %69, %cst_34 {dimension_numbers = #tpu.dot_dimension_numbers<[2], [2], [1], [1], [0, 0, 0, 1, 1, 1], [0], [0]>} : vector<4x8x8xbf16>, vector<4x8x8xbf16>, vector<4x8x8xf32> -> vector<4x8x8xf32>
    "tpu.trace_stop"() : () -> ()
    %71 = vector.shape_cast %70 : vector<4x8x8xf32> to vector<32x8xf32>
    %72 = arith.truncf %71 : vector<32x8xf32> to vector<32x8xbf16>
    %c0_35 = arith.constant 0 : index
    %c0_36 = arith.constant 0 : index
    %73 = vector.load %arg11[%c0_35, %c0_36] : memref<32x32xbf16, #tpu.memory_space<vmem>>, vector<32x32xbf16>
    %cst_37 = arith.constant dense<0.000000e+00> : vector<32x8xf32>
    %74 = tpu.matmul %73, %72, %cst_37 {dimension_numbers = #tpu.dot_dimension_numbers<[1], [0], [0], [1], [0, 0, 1, 1], [], []>} : vector<32x32xbf16>, vector<32x8xbf16>, vector<32x8xf32> -> vector<32x8xf32>
    %c0_38 = arith.constant 0 : index
    %c0_39 = arith.constant 0 : index
    %75 = vector.load %arg12[%c0_38, %c0_39] : memref<32x1xf32, #tpu.memory_space<vmem>>, vector<32x1xf32>
    %76 = vector.broadcast %75 : vector<32x1xf32> to vector<32x8xf32>
    %77 = arith.addf %74, %76 : vector<32x8xf32>
    %78 = arith.truncf %77 : vector<32x8xf32> to vector<32x8xbf16>
    %79 = tpu.transpose %78, [1, 0] : vector<32x8xbf16> -> vector<8x32xbf16>
    %80 = arith.extf %79 : vector<8x32xbf16> to vector<8x32xf32>
    %81 = arith.addf %1, %80 : vector<8x32xf32>
    %c0_40 = arith.constant 0 : index
    %c0_41 = arith.constant 0 : index
    %82 = vector.load %arg13[%c0_40, %c0_41] : memref<1x32xf32, #tpu.memory_space<vmem>>, vector<1x32xf32>
    %c0_42 = arith.constant 0 : index
    %c0_43 = arith.constant 0 : index
    %83 = vector.load %arg14[%c0_42, %c0_43] : memref<1x32xf32, #tpu.memory_space<vmem>>, vector<1x32xf32>
    %cst_44 = arith.constant dense<0.000000e+00> : vector<8xf32>
    %84 = vector.multi_reduction <add>, %81, %cst_44 [1] : vector<8x32xf32> to vector<8xf32>
    %85 = vector.shape_cast %84 : vector<8xf32> to vector<8x1xf32>
    %cst_45 = arith.constant 3.200000e+01 : f32
    %86 = vector.broadcast %cst_45 : f32 to vector<8x1xf32>
    %87 = arith.divf %85, %86 : vector<8x1xf32>
    %88 = vector.broadcast %87 : vector<8x1xf32> to vector<8x32xf32>
    %89 = arith.subf %81, %88 : vector<8x32xf32>
    %90 = arith.mulf %89, %89 : vector<8x32xf32>
    %cst_46 = arith.constant dense<0.000000e+00> : vector<8xf32>
    %91 = vector.multi_reduction <add>, %90, %cst_46 [1] : vector<8x32xf32> to vector<8xf32>
    %92 = vector.shape_cast %91 : vector<8xf32> to vector<8x1xf32>
    %cst_47 = arith.constant 0.0322580636 : f32
    %93 = vector.broadcast %cst_47 : f32 to vector<8x1xf32>
    %94 = arith.mulf %92, %93 : vector<8x1xf32>
    %95 = math.sqrt %94 : vector<8x1xf32>
    %96 = vector.broadcast %82 : vector<1x32xf32> to vector<8x32xf32>
    %97 = arith.mulf %96, %89 : vector<8x32xf32>
    %cst_48 = arith.constant 9.99999997E-7 : f32
    %98 = vector.broadcast %cst_48 : f32 to vector<8x1xf32>
    %99 = arith.addf %95, %98 : vector<8x1xf32>
    %100 = tpu.reciprocal %99 : vector<8x1xf32> -> vector<8x1xf32>
    %101 = vector.broadcast %100 : vector<8x1xf32> to vector<8x32xf32>
    %102 = arith.mulf %97, %101 : vector<8x32xf32>
    %103 = vector.broadcast %83 : vector<1x32xf32> to vector<8x32xf32>
    %104 = arith.addf %102, %103 : vector<8x32xf32>
    %105 = arith.truncf %104 : vector<8x32xf32> to vector<8x32xbf16>
    %c0_49 = arith.constant 0 : index
    %c0_50 = arith.constant 0 : index
    %106 = vector.load %arg15[%c0_49, %c0_50] : memref<32x64xbf16, #tpu.memory_space<vmem>>, vector<32x64xbf16>
    %cst_51 = arith.constant dense<0.000000e+00> : vector<8x64xf32>
    %107 = tpu.matmul %105, %106, %cst_51 {dimension_numbers = #tpu.dot_dimension_numbers<[1], [0], [0], [1], [0, 0, 1, 1], [], []>} : vector<8x32xbf16>, vector<32x64xbf16>, vector<8x64xf32> -> vector<8x64xf32>
    %c0_52 = arith.constant 0 : index
    %c0_53 = arith.constant 0 : index
    %108 = vector.load %arg16[%c0_52, %c0_53] : memref<1x64xf32, #tpu.memory_space<vmem>>, vector<1x64xf32>
    %109 = vector.broadcast %108 : vector<1x64xf32> to vector<8x64xf32>
    %110 = arith.addf %107, %109 : vector<8x64xf32>
    %cst_54 = arith.constant 0.000000e+00 : f32
    %111 = vector.broadcast %cst_54 : f32 to vector<8x64xf32>
    %112 = arith.maximumf %110, %111 : vector<8x64xf32>
    %113 = arith.truncf %112 : vector<8x64xf32> to vector<8x64xbf16>
    %c0_55 = arith.constant 0 : index
    %c0_56 = arith.constant 0 : index
    %114 = vector.load %arg17[%c0_55, %c0_56] : memref<64x32xbf16, #tpu.memory_space<vmem>>, vector<64x32xbf16>
    %cst_57 = arith.constant dense<0.000000e+00> : vector<8x32xf32>
    %115 = tpu.matmul %113, %114, %cst_57 {dimension_numbers = #tpu.dot_dimension_numbers<[1], [0], [0], [1], [0, 0, 1, 1], [], []>} : vector<8x64xbf16>, vector<64x32xbf16>, vector<8x32xf32> -> vector<8x32xf32>
    %c0_58 = arith.constant 0 : index
    %c0_59 = arith.constant 0 : index
    %116 = vector.load %arg18[%c0_58, %c0_59] : memref<1x32xf32, #tpu.memory_space<vmem>>, vector<1x32xf32>
    %117 = vector.broadcast %116 : vector<1x32xf32> to vector<8x32xf32>
    %118 = arith.addf %115, %117 : vector<8x32xf32>
    %119 = arith.addf %81, %118 : vector<8x32xf32>
    %120 = vector.shape_cast %119 : vector<8x32xf32> to vector<1x8x32xf32>
    %c0_60 = arith.constant 0 : index
    %c0_61 = arith.constant 0 : index
    %c0_62 = arith.constant 0 : index
    %121 = vector.load %arg19[%c0_60, %c0_61, %c0_62] : memref<1x8x32xf32, #tpu.memory_space<vmem>>, vector<1x8x32xf32>
    tpu.vector_store %arg19[%c0_60, %c0_61, %c0_62], %120 {strides = array<i32>} : memref<1x8x32xf32, #tpu.memory_space<vmem>>, vector<1x8x32xf32>,
    return
  }
  func.func @transform_0(%arg0: i32) -> (i32, i32, i32) {
    %c0_i32 = arith.constant 0 : i32
    %c0_i32_0 = arith.constant 0 : i32
    %c0_i32_1 = arith.constant 0 : i32
    return %arg0, %c0_i32, %c0_i32_0 : i32, i32, i32
  }
  func.func @transform_1(%arg0: i32) -> (i32, i32, i32) {
    %c0_i32 = arith.constant 0 : i32
    %c0_i32_0 = arith.constant 0 : i32
    %c0_i32_1 = arith.constant 0 : i32
    return %arg0, %c0_i32, %c0_i32_0 : i32, i32, i32
  }
  func.func @transform_2(%arg0: i32) -> (i32, i32) {
    %c0_i32 = arith.constant 0 : i32
    %c0_i32_0 = arith.constant 0 : i32
    %c0_i32_1 = arith.constant 0 : i32
    return %c0_i32, %c0_i32_0 : i32, i32
  }
  func.func @transform_3(%arg0: i32) -> (i32, i32) {
    %c0_i32 = arith.constant 0 : i32
    %c0_i32_0 = arith.constant 0 : i32
    %c0_i32_1 = arith.constant 0 : i32
    return %c0_i32, %c0_i32_0 : i32, i32
  }
  func.func @transform_4(%arg0: i32) -> (i32, i32) {
    %c0_i32 = arith.constant 0 : i32
    %c0_i32_0 = arith.constant 0 : i32
    %c0_i32_1 = arith.constant 0 : i32
    return %c0_i32, %c0_i32_0 : i32, i32
  }
  func.func @transform_5(%arg0: i32) -> (i32, i32) {
    %c0_i32 = arith.constant 0 : i32
    %c0_i32_0 = arith.constant 0 : i32
    %c0_i32_1 = arith.constant 0 : i32
    return %c0_i32, %c0_i32_0 : i32, i32
  }
  func.func @transform_6(%arg0: i32) -> (i32, i32) {
    %c0_i32 = arith.constant 0 : i32
    %c0_i32_0 = arith.constant 0 : i32
    %c0_i32_1 = arith.constant 0 : i32
    return %c0_i32, %c0_i32_0 : i32, i32
  }
  func.func @transform_7(%arg0: i32) -> (i32, i32) {
    %c0_i32 = arith.constant 0 : i32
    %c0_i32_0 = arith.constant 0 : i32
    %c0_i32_1 = arith.constant 0 : i32
    return %c0_i32, %c0_i32_0 : i32, i32
  }
  func.func @transform_8(%arg0: i32) -> (i32, i32) {
    %c0_i32 = arith.constant 0 : i32
    %c0_i32_0 = arith.constant 0 : i32
    %c0_i32_1 = arith.constant 0 : i32
    return %c0_i32, %c0_i32_0 : i32, i32
  }
  func.func @transform_9(%arg0: i32) -> (i32, i32) {
    %c0_i32 = arith.constant 0 : i32
    %c0_i32_0 = arith.constant 0 : i32
    %c0_i32_1 = arith.constant 0 : i32
    return %c0_i32, %c0_i32_0 : i32, i32
  }
  func.func @transform_10(%arg0: i32) -> (i32, i32) {
    %c0_i32 = arith.constant 0 : i32
    %c0_i32_0 = arith.constant 0 : i32
    %c0_i32_1 = arith.constant 0 : i32
    return %c0_i32, %c0_i32_0 : i32, i32
  }
  func.func @transform_11(%arg0: i32) -> (i32, i32) {
    %c0_i32 = arith.constant 0 : i32
    %c0_i32_0 = arith.constant 0 : i32
    %c0_i32_1 = arith.constant 0 : i32
    return %c0_i32, %c0_i32_0 : i32, i32
  }
  func.func @transform_12(%arg0: i32) -> (i32, i32) {
    %c0_i32 = arith.constant 0 : i32
    %c0_i32_0 = arith.constant 0 : i32
    %c0_i32_1 = arith.constant 0 : i32
    return %c0_i32, %c0_i32_0 : i32, i32
  }
  func.func @transform_13(%arg0: i32) -> (i32, i32) {
    %c0_i32 = arith.constant 0 : i32
    %c0_i32_0 = arith.constant 0 : i32
    %c0_i32_1 = arith.constant 0 : i32
    return %c0_i32, %c0_i32_0 : i32, i32
  }
  func.func @transform_14(%arg0: i32) -> (i32, i32) {
    %c0_i32 = arith.constant 0 : i32
    %c0_i32_0 = arith.constant 0 : i32
    %c0_i32_1 = arith.constant 0 : i32
    return %c0_i32, %c0_i32_0 : i32, i32
  }
  func.func @transform_15(%arg0: i32) -> (i32, i32) {
    %c0_i32 = arith.constant 0 : i32
    %c0_i32_0 = arith.constant 0 : i32
    %c0_i32_1 = arith.constant 0 : i32
    return %c0_i32, %c0_i32_0 : i32, i32
  }
  func.func @transform_16(%arg0: i32) -> (i32, i32) {
    %c0_i32 = arith.constant 0 : i32
    %c0_i32_0 = arith.constant 0 : i32
    %c0_i32_1 = arith.constant 0 : i32
    return %c0_i32, %c0_i32_0 : i32, i32
  }
  func.func @transform_17(%arg0: i32) -> (i32, i32) {
    %c0_i32 = arith.constant 0 : i32
    %c0_i32_0 = arith.constant 0 : i32
    %c0_i32_1 = arith.constant 0 : i32
    return %c0_i32, %c0_i32_0 : i32, i32
  }
  func.func @transform_18(%arg0: i32) -> (i32, i32, i32) {
    %c0_i32 = arith.constant 0 : i32
    %c0_i32_0 = arith.constant 0 : i32
    %c0_i32_1 = arith.constant 0 : i32
    return %arg0, %c0_i32, %c0_i32_0 : i32, i32, i32
  }
}

</mosaic_0001>

<bundles_post_ra>
// kernel: encoder_layer.1
= control target key start
LH: loop header
LB: loop body
LE: loop exit
PB: predicated region body
PF: predicated region fallthrough
CT: control target
= control target key end

     0   :  { %s2537_s0 = inlined_call_operand.vmem [shape: f32[2,8,32], index: 0, kind: input, shape index: {}]   ;;  %s2538_s1 = inlined_call_operand.vmem [shape: f32[2,1,8], index: 1, kind: input, shape index: {}]   ;;  %s2539_s2 = inlined_call_operand.vmem [shape: f32[1,32], index: 2, kind: input, shape index: {}]   ;;  %s2540_s3 = inlined_call_operand.vmem [shape: f32[1,32], index: 3, kind: input, shape index: {}]   ;;  %s2541_s4 = inlined_call_operand.vmem [shape: bf16[32,32], index: 4, kind: input, shape index: {}]   ;;  %s2542_s5 = inlined_call_operand.vmem [shape: f32[32,1], index: 5, kind: input, shape index: {}]   ;;  %s2543_s6 = inlined_call_operand.vmem [shape: bf16[32,32], index: 6, kind: input, shape index: {}]   ;;  %s2544_s7 = inlined_call_operand.vmem [shape: f32[32,1], index: 7, kind: input, shape index: {}]   ;;  %s2545_s8 = inlined_call_operand.vmem [shape: bf16[32,32], index: 8, kind: input, shape index: {}]   ;;  %s2546_s9 = inlined_call_operand.vmem [shape: f32[32,1], index: 9, kind: input, shape index: {}]   ;;  %s2547_s10 = inlined_call_operand.vmem [shape: bf16[32,32], index: 10, kind: input, shape index: {}]   ;;  %s2548_s11 = inlined_call_operand.vmem [shape: f32[32,1], index: 11, kind: input, shape index: {}]   ;;  %s2549_s12 = inlined_call_operand.vmem [shape: f32[1,32], index: 12, kind: input, shape index: {}]   ;;  %s2550_s13 = inlined_call_operand.vmem [shape: f32[1,32], index: 13, kind: input, shape index: {}]   ;;  %s2551_s14 = inlined_call_operand.vmem [shape: bf16[32,64], index: 14, kind: input, shape index: {}]   ;;  %s2552_s15 = inlined_call_operand.vmem [shape: f32[1,64], index: 15, kind: input, shape index: {}]   ;;  %s2553_s16 = inlined_call_operand.vmem [shape: bf16[64,32], index: 16, kind: input, shape index: {}]   ;;  %s2554_s17 = inlined_call_operand.vmem [shape: f32[1,32], index: 17, kind: input, shape index: {}]   ;;  %s2555_s18 = inlined_call_operand.hbm [shape: f32[2,8,32], index: 18, kind: output, shape index: {}]  }
   0x1   :  { %2561 = sst [smem:[#allocation10_spill]] %s2537_s0 }
   0x2   :  { %2562 = sst [smem:[#allocation11_spill]] %s2538_s1 }
   0x3   :  { %2563 = sst [smem:[#allocation12_spill]] %s2539_s2 }
   0x4   :  { %23 = vsyncpa [#allocation3], 0 }
   0x5   :  { %25 = vsyncpa [#allocation3 + $0x1], 0  ;;  %s2225_s27 = smov 0   ;;  %s2227_s28 = smov 0  }
   0x6   :  { %s2229_s29 = smov 0   ;;  %s2231_s30 = smov 0  }
   0x7 LB: > { %2564 = sst [smem:[#allocation5_spill]] %s2111_s27  ;;  %s2246_s0 = sadd.s32 4294967295, %s2123_s30   ;;  %s2123_s30 = sphi %s2231_s30, %s2576_s30   ;;  %s2119_s29 = sphi %s2229_s29, %s2578_s29   ;;  %s2115_s28 = sphi %s2227_s28, %s2580_s28   ;;  %s2111_s27 = sphi %s2225_s27, %s2579_s27  }
   0x8   : > { %2565 = sst [smem:[#allocation6_spill]] %s2119_s29  ;;  %s1798_s19 = sadd.s32 4294967294, %s2123_s30  }
   0x9   : > { %s2250_s1 = sadd.s32 1, %s2123_s30   ;;  %s426_s20 = sadd.s32 1, %s2119_s29 }
   0xa   : > { %2566 = sst [smem:[#allocation7_spill]] %s2250_s1  ;;  %s423_s21 = ssub.s32 %s2123_s30, %s2250_s1 }
   0xb   : > { %p436_p0 = scmp.ne.s32.totalorder %s2119_s29, %s2115_s28  ;;  %p424_p1 = scmp.eq.s32.totalorder %s423_s21, 0 }
   0xc   : > { %p437_p2 = scmp.eq.s32.totalorder %s2246_s0, 1  ;;  %p442_p3 = scmp.ne.s32.totalorder %s2115_s28, %s2111_s27 }
   0xd   : > { %p443_p4 = scmp.eq.s32.totalorder %s1798_s19, 1  ;;  %p1801_p7 = scmp.ge.s32.totalorder %s2123_s30, 1 }
   0xe   : > { %s2261_s22 = scalar_select %p424_p1, %s2119_s29, %s426_s20  }
   0xf   : > { %p2263_p5 = por %p437_p2, %p436_p0  ;;  %p2267_p6 = por %p443_p4, %p442_p3 }
  0x10   : > { %2567 = sst [smem:[#allocation8_spill]] %s2261_s22  ;;  %p522_p8 = scmp.lt.s32.totalorder %s2123_s30, 3 }
  0x11   : > { %s2569_s23 = scalar_select %p2267_p6, 1, 0 }
  0x12   : > { %p523_p9 = pnand %p1801_p7, %p522_p8 }
  0x13   : > { %2570 = sst [smem:[#allocation9_spill]] %s2569_s23  ;;  %p578_p10 = scmp.lt.s32.totalorder (!%p523_p9), %s2246_s0, 1 }
  0x14   : > { %526 = sbr.rel (%p523_p9) target bundleno = 2436 (0x984), region = 92  ;;  %s2571_s20 = sld [smem:[#allocation10_spill]] (!%p523_p9) }
  0x15   : > { %s2572_s26 = sld [smem:[#allocation12_spill]] (!%p523_p9)  ;;  %s575_s23 = sand.u32 (!%p523_p9), 1, %s2115_s28  }
  0x19   : > { %s2275_s24 = scalar_select %p578_p10, %s2246_s0, 1  ;;  %vm592_vm0 = vcmask 261120   ;;  %v2025_v7 = vld [vmem:[%s2541_s4] sm:$0xff]   ;;  %v2125_v10 = vmov 0   ;;  %v635_v11 = vld [vmem:[%s2542_s5 + $0x10] sm:$0xff]  ;;  %v634_v12 = vld [vmem:[%s2542_s5 + $0x8] sm:$0xff] }
  0x1a   : > { %v2026_v8 = vld [vmem:[%s2543_s6] sm:$0xff]   ;;  %1885 = vmatprep.mubr.msk.bf16.mxu0 %vm592_vm0, %v2025_v7  ;;  %2023 = vset.pattern.permute.xlu1 %v2125_v10  ;;  %v636_v13 = vld [vmem:[%s2542_s5 + $0x18] sm:$0xff]  ;;  %v730_v15 = vld [vmem:[%s2544_s7 + $0x8] sm:$0xff]  ;;  %v2126_v36 = vmov 0.0   ;;  %vm2127_vm3 = vmmov 0   ;;  %vm945_vm4 = vcmask 1043456  }
  0x1b   : > { %s1803_s25 = sshll.u32 %s2275_s24, 3  ;;  %1891 = vmatprep.mubr.msk.bf16.mxu1 %vm592_vm0, %v2026_v8  ;;  %v633_v9 = vld [vmem:[%s2542_s5] sm:$0xff]  ;;  %2024 = vset.pattern.permute.xlu0 %v2125_v10  ;;  %v731_v16 = vld [vmem:[%s2544_s7 + $0x10] sm:$0xff]  ;;  %v732_v17 = vld [vmem:[%s2544_s7 + $0x18] sm:$0xff]  ;;  %vm941_vm5 = vcmask 64512   ;;  %vm1670_vm9 = vcmask 523264  }
  0x1c   : > { %s581_s21 = scalar_lea.vmem %s2571_s20, %s1803_s25  ;;  %639 = vperm.xlu1 %2023, %v633_v9   ;;  %v729_v14 = vld [vmem:[%s2544_s7] sm:$0xff]  ;;  %v2027_v34 = vld [vmem:[%s2541_s4 + $0x8] sm:$0xff]   ;;  %s2573_s20 = sld [smem:[#allocation11_spill]] }
  0x1d   : > { %v2281_v0 = vld [vmem:[%s581_s21] sm:$0xff]  ;;  %v2028_v35 = vld [vmem:[%s2543_s6 + $0x8] sm:$0xff]  }
  0x1e   : > { %v593_v1 = vsel %vm592_vm0, %v2281_v0, 0.0  ;;  %v1804_v26 = vld [vmem:[%s2572_s26] ss:$0 sm:$0xff]  ;;  %v2030_v38 = vld [vmem:[%s2545_s8 + $0x8] sm:$0xff]   ;;  %s1802_s26 = sshll.u32 %s575_s23, 3 }
  0x1f   : > { %594 = vadd.xlane.f32.xlu0 %v593_v1  ;;  %v1805_v29 = vld [vmem:[%s2540_s3] ss:$0 sm:$0xff] }
  0x20   : > { %644 = vperm.xlu1 %2023, %v634_v12   ;;  %v2029_v37 = vld [vmem:[%s2545_s8] sm:$0xff]  }
  0x22   : > { %s584_s1 = scalar_lea.vmem %s2573_s20, %s2275_s24  ;;  %s1843_s20 = sshll.u32 %s2246_s0, 7 }
  0x23   : > { %s2495_s22 = scalar_lea.hbm %s2555_s18, %s1843_s20  ;;  %s1717_s0 = scalar_lea.sflag [#allocation3], %s575_s23 }
  0x24   : > { %654 = vperm.xlu1 %2023, %v636_v13  }
  0x28   : > { %735 = vperm.xlu1 %2023, %v729_v14  }
  0x2c   : > { %740 = vperm.xlu1 %2023, %v730_v15  }
  0x30   : > { %745 = vperm.xlu1 %2023, %v731_v16   ;;  %v920_v16 = vlaneseq }
  0x34   : > { %750 = vperm.xlu1 %2023, %v732_v17   ;;  %v587_v17 = vld [vmem:[%s584_s1] sm:$0x1]  ;;  %s577_s1 = scalar_lea.vmem [#allocation2], %s1802_s26  ;;  %s2129_s26 = smov [#allocation2]  }
  0x35   : > { %vm588_vm6 = vcmp.ne.f32.partialorder %v587_v17, 0.0  ;;  %s1730_s24 = sshll.u32 %s577_s1, 4  ;;  %s2067_s25 = sshll.u32 %s2129_s26, 4  ;;  %s2497_s24 = int_to_ptr.vmem [resolvable:$true] %s1730_s24  ;;  %s2068_s25 = int_to_ptr.vmem [resolvable:$false] %s2067_s25 }
  0x36   : > { %s2063_s27 = scalar_lea.vmem %s2497_s24, 128  ;;  %s2069_s19 = scalar_lea.vmem %s2068_s25, 256 }
  0x37   : > { %p2064_p11 = scmp.ne.s32.totalorder %s2497_s24, %s2063_s27  ;;  %p2070_p0 = scmp.lt.s32.totalorder %s2497_s24, %s2068_s25 }
  0x38   : > { %p2071_p1 = scmp.lt.s32.totalorder %s2069_s19, %s2063_s27 }
  0x39   : > { %p2065_p12 = pnand %p2064_p11, %p2263_p5 }
  0x3a   : > { %p2072_p2 = por %p2071_p1, %p2070_p0 }
  0x3b   : > { %p2066_p13 = pneg %p2065_p12 }
  0x3d   : > { %p2073_p3 = pnand %p2072_p2, %p2066_p13 }
  0x97   : > { %v640_v39 = vpop.permute.xlu1 %639 }
  0x9b   : > { %v645_v40 = vpop.permute.xlu1 %644 }
  0x9f   : > { %v655_v41 = vpop.permute.xlu1 %654 }
  0xa3   : > { %v736_v42 = vpop.permute.xlu1 %735 }
  0xa7   : > { %v741_v43 = vpop.permute.xlu1 %740 }
  0xa8   : > { %v595_v2 = vpop.xlane.xlu0 %594 }
  0xa9   : > { %v597_v3 = vmul.f32 0.03125, %v595_v2 }
  0xab   : > { %v598_v4 = vsub.f32 %v2281_v0, %v597_v3  ;;  %v746_v44 = vpop.permute.xlu1 %745 }
  0xad   : > { %v599_v5 = vmul.f32 %v598_v4, %v598_v4  ;;  %v617_v27 = vmul.f32 %v1804_v26, %v598_v4 }
  0xaf   : > { %v600_v6 = vsel %vm592_vm0, %v599_v5, 0.0  ;;  %v751_v58 = vpop.permute.xlu1 %750 }
  0xb0   : > { %601 = vadd.xlane.f32.xlu0 %v600_v6 }
  0xc6   : > { %649 = vperm.xlu0 %2024, %v635_v11  }
 0x139   : > { %v602_v18 = vpop.xlane.xlu0 %601 }
 0x13a   : > { %v603_v19 = vmul.f32 0.032258064, %v602_v18  ;;  %v921_v18 = vshrl.u32 %v920_v16, 7  ;;  %v1419_v16 = vld [vmem:[%s2548_s11 + $0x10] sm:$0xff] }
 0x13c   : > { %2039 = vrsqrt.f32 %v603_v19  ;;  %vm606_vm1 = vcmp.eq.f32.partialorder %v603_v19, inf  ;;  %v609_v22 = vand.u32 2147483648, %v603_v19  ;;  %vm608_vm2 = vcmp.eq.f32.partialorder %v603_v19, 0.0 }
 0x141   : > { %v650_v48 = vpop.permute.xlu0 %649 }
 0x149   : > { %v2040_v20 = vpop.eup %2039 }
 0x14a   : > { %v605_v21 = vmul.f32 %v2040_v20, %v603_v19  ;;  %v922_v20 = vsub.s32 0, %v921_v18 }
 0x14c   : > { %v607_v23 = vsel %vm606_vm1, %v603_v19, %v605_v21  ;;  %v2128_v21 = vmov -1e+09  }
 0x14d   : > { %v610_v24 = vsel %vm608_vm2, %v609_v22, %v607_v23  ;;  %v589_v22 = vsel %vm588_vm6, 0.0, %v2128_v21 }
 0x14e   : > { %v618_v25 = vadd.f32 1e-06, %v610_v24  ;;  %v923_v24 = vrot.slane %v589_v22, %v922_v20 }
 0x150   : > { %2041 = vrcp.f32 %v618_v25 }
 0x15d   : > { %v2042_v28 = vpop.eup %2041 }
 0x15e   : > { %v620_v30 = vmul.f32 %v2042_v28, %v617_v27 }
 0x160   : > { %v627_v31 = vadd.f32 %v1805_v29, %v620_v30 }
 0x162   : > { %v628_v32 = vpack.c.bf16 %v627_v31, %v627_v31 }
 0x164   : > { %1977 = vmatprep.subr.msk.bf16.mxu0 %vm592_vm0, %v628_v32  ;;  %1978 = vmatprep.subr.msk.bf16.mxu1 %vm592_vm0, %v628_v32  ;;  %v674_v33 = vsel %vm592_vm0, %v628_v32, 0 }
 0x165   : > { %1884 = vmatpush3.bf16.xpose.msra.mxu0 %v674_v33  ;;  %1890 = vmatpush3.bf16.xpose.msra.mxu1 %v674_v33 }
 0x166   : > { %1979 = vmatprep.subr.msk.bf16.mxu0 %vm592_vm0, %v628_v32  ;;  %1901 = vmatprep.subr.bf16.mxu1 %v2126_v36 }
 0x16c   : > { %1886 = vmatmul.mubr.msk.bf16.vlgmr.msra.gmra.mxu0 %vm592_vm0, %v2027_v34  ;;  %1892 = vmatmul.mubr.msk.bf16.vlgmr.msra.gmra.mxu1 %vm592_vm0, %v2028_v35 }
 0x16d   : > { %1896 = vmatpush3.bf16.xpose.msra.mxu0 %v674_v33  ;;  %1897 = vmatprep.mubr.msk.bf16.mxu0 %vm592_vm0, %v2029_v37 }
 0x16e   : > { %1907 = vmatprep.subr.bf16.mxu0 %v2126_v36  ;;  %1903 = vmatprep.mubr.msk.bf16.mxu1 %vm2127_vm3, %v2126_v36 }
 0x174   : > { %1898 = vmatmul.mubr.msk.bf16.vlgmr.msra.gmra.mxu0 %vm592_vm0, %v2030_v38 }
 0x175   : > { %1909 = vmatprep.mubr.msk.bf16.mxu0 %vm2127_vm3, %v2126_v36 }
 0x22c   : > { %v1887_v45 = vpop.f32.mrf.mxu0  ;;  %v1893_v46 = vpop.f32.mrf.mxu1 }
 0x22d   : > { %v812_v47 = vadd.f32 %v1893_v46, %v746_v44  ;;  %v719_v57 = vadd.f32 %v1887_v45, %v650_v48 }
 0x22e   : > { %v710_v49 = vpop.f32.mrf.mxu0  ;;  %v803_v50 = vpop.f32.mrf.mxu1 }
 0x22f   : > { %v917_v51 = vpack.c.bf16 %v812_v47, %v812_v47  ;;  %v711_v52 = vadd.f32 %v710_v49, %v640_v39  ;;  %v804_v53 = vadd.f32 %v803_v50, %v736_v42  ;;  %v913_v5 = vpack.c.bf16 %v719_v57, %v719_v57 }
 0x230   : > { %v1888_v54 = vpop.f32.mrf.mxu0  ;;  %v1894_v55 = vpop.f32.mrf.mxu1 }
 0x231   : > { %v1071_v56 = vsel %vm945_vm4, %v917_v51, 0  ;;  %v911_v59 = vpack.c.bf16 %v711_v52, %v711_v52  ;;  %v915_v60 = vpack.c.bf16 %v804_v53, %v804_v53  ;;  %v815_v61 = vadd.f32 %v1894_v55, %v751_v58  ;;  %v822_v52 = vld [vmem:[%s2546_s9] sm:$0xff] }
 0x232   : > { %v713_v62 = vpop.f32.mrf.mxu0  ;;  %v806_v63 = vpop.f32.mrf.mxu1  ;;  %v722_v6 = vadd.f32 %v1888_v54, %v655_v41 }
 0x233   : > { %v947_v1 = vsel %vm945_vm4, %v915_v60, 0  ;;  %v714_v2 = vadd.f32 %v713_v62, %v645_v40  ;;  %v807_v3 = vadd.f32 %v806_v63, %v741_v43  ;;  %925 = vxpose.xlu1.c.b16.start.end [1/1] (short) (narrow) %v911_v59, 16  ;;  %v918_v4 = vpack.c.bf16 %v815_v61, %v815_v61 }
 0x234   : > { %1902 = vmatpush3.bf16.msra.mxu1 %v947_v1  ;;  %v914_v11 = vpack.c.bf16 %v722_v6, %v722_v6  ;;  %v2375_v19 = vpop.f32.mrf.mxu0 }
 0x235   : > { %v912_v7 = vpack.c.bf16 %v714_v2, %v714_v2  ;;  %v916_v8 = vpack.c.bf16 %v807_v3, %v807_v3  ;;  %1913 = vmatprep.subr.bf16.mxu1 %v2126_v36  ;;  %v1133_v9 = vsel %vm945_vm4, %v918_v4, 0 }
 0x236   : > { %v2377_v23 = vpop.f32.mrf.mxu0 }
 0x237   : > { %v1009_v10 = vsel %vm945_vm4, %v916_v8, 0  ;;  %989 = vxpose.xlu0.c.b16.start.end [1/1] (short) (narrow) %v912_v7, 16  ;;  %1051 = vxpose.xlu1.c.b16.start.end [1/1] (short) (narrow) %v913_v5, 16 }
 0x238   : > { %1908 = vmatpush3.bf16.msra.mxu0 %v1009_v10  ;;  %v2379_v25 = vpop.f32.mrf.mxu0  ;;  %v824_v10 = vld [vmem:[%s2546_s9 + $0x10] sm:$0xff] }
 0x239   : > { %1919 = vmatprep.subr.bf16.mxu0 %v2126_v36 }
 0x23a   : > { %v2381_v28 = vpop.f32.mrf.mxu0 }
 0x23b   : > { %1113 = vxpose.xlu1.c.b16.start.end [1/1] (short) (narrow) %v914_v11, 16  ;;  %v825_v11 = vld [vmem:[%s2546_s9 + $0x18] sm:$0xff] }
 0x295   : > { %v933_v12 = vpop.trf.xlu1 }
 0x296   : > { %1904 = vmatmul.mubr.msk.bf16.vlgmr.msra.gmra.mxu1 %vm941_vm5, %v933_v12  ;;  %v1418_v12 = vld [vmem:[%s2548_s11 + $0x8] sm:$0xff] }
 0x297   : > { %1914 = vmatpush3.bf16.msra.mxu1 %v1071_v56  ;;  %1915 = vmatprep.mubr.msk.bf16.mxu1 %vm2127_vm3, %v2126_v36 }
 0x298   : > { %1925 = vmatprep.subr.bf16.mxu1 %v2126_v36 }
 0x299   : > { %v997_v13 = vpop.trf.xlu0  ;;  %v1059_v14 = vpop.trf.xlu1 }
 0x29a   : > { %1910 = vmatmul.mubr.msk.bf16.vlgmr.msra.gmra.mxu0 %vm941_vm5, %v997_v13  ;;  %v823_v13 = vld [vmem:[%s2546_s9 + $0x8] sm:$0xff] }
 0x29b   : > { %1920 = vmatpush3.bf16.msra.mxu0 %v1133_v9  ;;  %1921 = vmatprep.mubr.msk.bf16.mxu0 %vm2127_vm3, %v2126_v36 }
 0x29c   : > { %1931 = vmatprep.subr.bf16.mxu0 %v2126_v36 }
 0x29d   : > { %v1121_v15 = vpop.trf.xlu1 }
 0x29e   : > { %1916 = vmatmul.mubr.msk.bf16.vlgmr.msra.gmra.mxu1 %vm941_vm5, %v1059_v14  ;;  %v1420_v14 = vld [vmem:[%s2548_s11 + $0x18] sm:$0xff] }
 0x29f   : > { %1927 = vmatprep.mubr.msk.bf16.mxu1 %vm2127_vm3, %v2126_v36 }
 0x2a2   : > { %1922 = vmatmul.mubr.msk.bf16.vlgmr.msra.gmra.mxu0 %vm941_vm5, %v1121_v15  ;;  %v1417_v15 = vld [vmem:[%s2548_s11] sm:$0xff] }
 0x2a3   : > { %1933 = vmatprep.mubr.msk.bf16.mxu0 %vm2127_vm3, %v2126_v36 }
 0x356   : > { %v983_v26 = vpop.f32.mrf.mxu1 }
 0x357   : > { %v984_v27 = vadd.f32 %v983_v26, %v923_v24 }
 0x358   : > { %v1905_v29 = vpop.f32.mrf.mxu1 }
 0x359   : > { %v1175_v30 = vsel %vm941_vm5, %v984_v27, -inf }
 0x35a   : > { %v986_v31 = vpop.f32.mrf.mxu1  ;;  %1176 = vmax.xlane.f32.xlu1 %v1175_v30  ;;  %v1045_v32 = vpop.f32.mrf.mxu0 }
 0x35b   : > { %v1046_v33 = vadd.f32 %v1045_v32, %v923_v24 }
 0x35c   : > { %v1906_v34 = vpop.f32.mrf.mxu1  ;;  %v1911_v35 = vpop.f32.mrf.mxu0 }
 0x35d   : > { %v1178_v37 = vsel %vm941_vm5, %v1046_v33, -inf }
 0x35e   : > { %v1107_v38 = vpop.f32.mrf.mxu1  ;;  %1179 = vmax.xlane.f32.xlu0 %v1178_v37  ;;  %v1048_v39 = vpop.f32.mrf.mxu0 }
 0x35f   : > { %v1108_v40 = vadd.f32 %v1107_v38, %v923_v24 }
 0x360   : > { %v1912_v41 = vpop.f32.mrf.mxu0  ;;  %v1917_v42 = vpop.f32.mrf.mxu1 }
 0x361   : > { %v1181_v43 = vsel %vm941_vm5, %v1108_v40, -inf }
 0x362   : > { %1182 = vmax.xlane.f32.xlu1 %v1181_v43  ;;  %v1110_v44 = vpop.f32.mrf.mxu1  ;;  %v1169_v45 = vpop.f32.mrf.mxu0 }
 0x363   : > { %v1170_v46 = vadd.f32 %v1169_v45, %v923_v24 }
 0x364   : > { %v1918_v47 = vpop.f32.mrf.mxu1  ;;  %v1923_v48 = vpop.f32.mrf.mxu0 }
 0x365   : > { %v1184_v49 = vsel %vm941_vm5, %v1170_v46, -inf }
 0x366   : > { %1185 = vmax.xlane.f32.xlu1 %v1184_v49  ;;  %v1172_v50 = vpop.f32.mrf.mxu0 }
 0x368   : > { %v1924_v51 = vpop.f32.mrf.mxu0 }
 0x377   : > { %828 = vperm.xlu1 %2023, %v822_v52  }
 0x3e3   : > { %v1177_v53 = vpop.xlane.xlu1 %1176 }
 0x3e4   : > { %v1187_v54 = vsub.f32 %v984_v27, %v1177_v53 }
 0x3e6   : > { %v1191_v55 = vmul.f32 1.442695, %v1187_v54 }
 0x3e7   : > { %v1180_v56 = vpop.xlane.xlu0 %1179 }
 0x3e8   : > { %2043 = vpow2.f32 %v1191_v55  ;;  %v1188_v57 = vsub.f32 %v1046_v33, %v1180_v56 }
 0x3ea   : > { %v1193_v58 = vmul.f32 1.442695, %v1188_v57 }
 0x3eb   : > { %v1183_v59 = vpop.xlane.xlu1 %1182 }
 0x3ec   : > { %2045 = vpow2.f32 %v1193_v58  ;;  %v1189_v60 = vsub.f32 %v1108_v40, %v1183_v59 }
 0x3ee   : > { %v1195_v61 = vmul.f32 1.442695, %v1189_v60 }
 0x3ef   : > { %v1186_v62 = vpop.xlane.xlu1 %1185 }
 0x3f0   : > { %2047 = vpow2.f32 %v1195_v61  ;;  %v1190_v63 = vsub.f32 %v1170_v46, %v1186_v62 }
 0x3f2   : > { %v1197_v1 = vmul.f32 1.442695, %v1190_v63 }
 0x3f3   : > { %v829_v17 = vpop.permute.xlu1 %828 }
 0x3f4   : > { %2049 = vpow2.f32 %v1197_v1  ;;  %v897_v32 = vadd.f32 %v2377_v23, %v829_v17 }
 0x3f5   : > { %v2044_v2 = vpop.eup %2043 }
 0x3f6   : > { %v1199_v3 = vsel %vm941_vm5, %v2044_v2, 0.0  ;;  %v1219_v40 = vpack.c.bf16 %v897_v32, %v897_v32 }
 0x3f7   : > { %1200 = vadd.xlane.f32.xlu1 %v1199_v3 }
 0x3f9   : > { %v2046_v4 = vpop.eup %2045 }
 0x3fa   : > { %v1202_v5 = vsel %vm941_vm5, %v2046_v4, 0.0 }
 0x3fb   : > { %1203 = vadd.xlane.f32.xlu0 %v1202_v5 }
 0x3fd   : > { %v2048_v6 = vpop.eup %2047 }
 0x3fe   : > { %v1205_v7 = vsel %vm941_vm5, %v2048_v6, 0.0 }
 0x3ff   : > { %1206 = vadd.xlane.f32.xlu1 %v1205_v7 }
 0x401   : > { %v2050_v8 = vpop.eup %2049 }
 0x402   : > { %v1208_v9 = vsel %vm941_vm5, %v2050_v8, 0.0 }
 0x403   : > { %1209 = vadd.xlane.f32.xlu0 %v1208_v9 }
 0x410   : > { %838 = vperm.xlu1 %2023, %v824_v10  }
 0x414   : > { %843 = vperm.xlu1 %2023, %v825_v11  }
 0x418   : > { %1428 = vperm.xlu1 %2023, %v1418_v12  }
 0x419   : > { %833 = vperm.xlu0 %2024, %v823_v13  }
 0x41c   : > { %1438 = vperm.xlu1 %2023, %v1420_v14  }
 0x41d   : > { %1423 = vperm.xlu0 %2024, %v1417_v15  }
 0x421   : > { %1433 = vperm.xlu0 %2024, %v1419_v16  }
 0x480   : > { %v1201_v18 = vpop.xlane.xlu1 %1200 }
 0x481   : > { %2051 = vrcp.f32 %v1201_v18 }
 0x484   : > { %v1204_v20 = vpop.xlane.xlu0 %1203 }
 0x485   : > { %2053 = vrcp.f32 %v1204_v20 }
 0x488   : > { %v1207_v21 = vpop.xlane.xlu1 %1206 }
 0x489   : > { %2055 = vrcp.f32 %v1207_v21 }
 0x48c   : > { %v1210_v22 = vpop.xlane.xlu0 %1209  ;;  %v839_v39 = vpop.permute.xlu1 %838 }
 0x48d   : > { %2057 = vrcp.f32 %v1210_v22  ;;  %v905_v45 = vadd.f32 %v2375_v19, %v839_v39  ;;  %v2031_v19 = vld [vmem:[%s2547_s10] sm:$0xff]  }
 0x48e   : > { %v2052_v24 = vpop.eup %2051 }
 0x48f   : > { %v1215_v26 = vmul.f32 %v2052_v24, %v2044_v2  ;;  %v1221_v49 = vpack.c.bf16 %v905_v45, %v905_v45  ;;  %v1830_v45 = vld [vmem:[%s2549_s12] ss:$0 sm:$0xff] }
 0x490   : > { %v844_v48 = vpop.permute.xlu1 %843 }
 0x491   : > { %v1223_v27 = vpack.c.bf16 %v1215_v26, %v1215_v26  ;;  %v908_v50 = vadd.f32 %v2379_v25, %v844_v48  ;;  %v1831_v48 = vld [vmem:[%s2550_s13] ss:$0 sm:$0xff] }
 0x492   : > { %v2054_v29 = vpop.eup %2053 }
 0x493   : > { %v1231_v30 = vsel %vm941_vm5, %v1223_v27, 0  ;;  %v1216_v31 = vmul.f32 %v2054_v29, %v2046_v4  ;;  %v1222_v51 = vpack.c.bf16 %v908_v50, %v908_v50 }
 0x494   : > { %1926 = vmatpush3.bf16.xpose.msra.mxu1 %v1231_v30  ;;  %v834_v35 = vpop.permute.xlu0 %833 }
 0x495   : > { %v1224_v33 = vpack.c.bf16 %v1216_v31, %v1216_v31  ;;  %1937 = vmatprep.subr.bf16.mxu1 %v2126_v36  ;;  %v900_v41 = vadd.f32 %v2381_v28, %v834_v35  ;;  %v2035_v35 = vld [vmem:[%s2553_s16 + $0x18] sm:$0xff]  }
 0x496   : > { %v2056_v34 = vpop.eup %2055 }
 0x497   : > { %v1277_v37 = vsel %vm941_vm5, %v1224_v33, 0  ;;  %v1217_v38 = vmul.f32 %v2056_v34, %v2048_v6  ;;  %v1220_v46 = vpack.c.bf16 %v900_v41, %v900_v41  ;;  %v2032_v6 = vld [vmem:[%s2547_s10 + $0x8] sm:$0xff]  }
 0x498   : > { %1932 = vmatpush3.bf16.xpose.msra.mxu0 %v1277_v37  ;;  %v1424_v10 = vpop.permute.xlu0 %1423  ;;  %v2033_v34 = vld [vmem:[%s2551_s14 + $0x8] sm:$0xff]   ;;  %v2036_v37 = vld [vmem:[%s2553_s16 + $0x10] sm:$0xff]  }
 0x499   : > { %v1225_v42 = vpack.c.bf16 %v1217_v38, %v1217_v38  ;;  %1943 = vmatprep.subr.bf16.mxu0 %v2126_v36 }
 0x49a   : > { %v2058_v43 = vpop.eup %2057 }
 0x49b   : > { %1928 = vmatmul.mubr.msk.bf16.vlgmr.msra.gmra.mxu1 %vm941_vm5, %v1219_v40  ;;  %v1323_v23 = vsel %vm941_vm5, %v1225_v42, 0  ;;  %v1218_v44 = vmul.f32 %v2058_v43, %v2050_v8  ;;  %v1429_v8 = vpop.permute.xlu1 %1428 }
 0x49c   : > { %1938 = vmatpush3.bf16.xpose.msra.mxu1 %v1323_v23  ;;  %1939 = vmatprep.mubr.msk.bf16.mxu1 %vm2127_vm3, %v2126_v36  ;;  %v1434_v18 = vpop.permute.xlu0 %1433 }
 0x49d   : > { %v1226_v47 = vpack.c.bf16 %v1218_v44, %v1218_v44 }
 0x49f   : > { %1934 = vmatmul.mubr.msk.bf16.vlgmr.msra.gmra.mxu0 %vm941_vm5, %v1220_v46  ;;  %v1369_v28 = vsel %vm941_vm5, %v1226_v47, 0  ;;  %v1439_v15 = vpop.permute.xlu1 %1438 }
 0x4a0   : > { %1944 = vmatpush3.bf16.xpose.msra.mxu0 %v1369_v28  ;;  %1945 = vmatprep.mubr.msk.bf16.mxu0 %vm2127_vm3, %v2126_v36 }
 0x4a1   : > { %1957 = vmatprep.subr.bf16.mxu0 %v2126_v36 }
 0x4a3   : > { %1940 = vmatmul.mubr.msk.bf16.vlgmr.msra.gmra.mxu1 %vm941_vm5, %v1221_v49 }
 0x4a4   : > { %1953 = vmatprep.mubr.msk.bf16.mxu1 %vm592_vm0, %v2031_v19  ;;  %v2038_v19 = vld [vmem:[%s2553_s16] sm:$0xff]  }
 0x4a7   : > { %1946 = vmatmul.mubr.msk.bf16.vlgmr.msra.gmra.mxu0 %vm941_vm5, %v1222_v51  ;;  %v2037_v51 = vld [vmem:[%s2553_s16 + $0x8] sm:$0xff]  }
 0x4a8   : > { %1961 = vmatprep.mubr.msk.bf16.mxu0 %vm2127_vm3, %v2126_v36  ;;  %1958 = vmatpush3.bf16.msra.mxu0 %v2033_v34 }
 0x4a9   : > { %1959 = vmatprep.subr.bf16.mxu0 %v2126_v36 }
 0x55b   : > { %v1267_v52 = vpop.f32.mrf.mxu1 }
 0x55d   : > { %v1929_v53 = vpop.f32.mrf.mxu1 }
 0x55f   : > { %v1270_v54 = vpop.f32.mrf.mxu1  ;;  %v1313_v25 = vpop.f32.mrf.mxu0 }
 0x560   : > { %v1411_v3 = vpack.c.bf16 %v1313_v25, %v1267_v52  ;;  %v1832_v52 = vld [vmem:[%s2552_s15] ss:$0 sm:$0xff] }
 0x561   : > { %v1930_v55 = vpop.f32.mrf.mxu1  ;;  %v1935_v56 = vpop.f32.mrf.mxu0 }
 0x563   : > { %v1316_v57 = vpop.f32.mrf.mxu0  ;;  %v1359_v58 = vpop.f32.mrf.mxu1 }
 0x565   : > { %v1936_v59 = vpop.f32.mrf.mxu0  ;;  %v1941_v60 = vpop.f32.mrf.mxu1 }
 0x567   : > { %v1362_v61 = vpop.f32.mrf.mxu1  ;;  %v1405_v62 = vpop.f32.mrf.mxu0 }
 0x568   : > { %v1412_v63 = vpack.c.bf16 %v1405_v62, %v1359_v58 }
 0x569   : > { %v1942_v1 = vpop.f32.mrf.mxu1  ;;  %v1947_v2 = vpop.f32.mrf.mxu0 }
 0x56a   : > { %1949 = vmatprep.subr.bf16.mxu1 %v1412_v63 }
 0x56b   : > { %v1408_v4 = vpop.f32.mrf.mxu0  ;;  %1950 = vmatpush3.bf16.msra.mxu1 %v1412_v63 }
 0x56c   : > { %1951 = vmatprep.subr.bf16.mxu1 %v1411_v3 }
 0x56d   : > { %v1948_v5 = vpop.f32.mrf.mxu0 }
 0x56f   : > { %1952 = vmatpush3.bf16.msra.mxu1 %v1411_v3 }
 0x570   : > { %1965 = vmatprep.subr.bf16.mxu1 %v2126_v36 }
 0x572   : > { %1954 = vmatmul.mubr.msk.bf16.vlgmr.msra.gmra.mxu1 %vm592_vm0, %v2032_v6 }
 0x573   : > { %1973 = vmatprep.mubr.msk.bf16.mxu1 %vm2127_vm3, %v2126_v36  ;;  %1966 = vmatpush3.bf16.msra.mxu1 %v2035_v35 }
 0x574   : > { %1967 = vmatprep.subr.bf16.mxu1 %v2126_v36 }
 0x577   : > { %1968 = vmatpush3.bf16.msra.mxu1 %v2036_v37 }
 0x578   : > { %1969 = vmatprep.subr.bf16.mxu1 %v2126_v36 }
 0x57b   : > { %1970 = vmatpush3.bf16.msra.mxu1 %v2037_v51 }
 0x57c   : > { %1971 = vmatprep.subr.bf16.mxu1 %v2126_v36  ;;  %v1836_v36 = vld [vmem:[%s2554_s17] ss:$0 sm:$0xff] }
 0x57f   : > { %1972 = vmatpush3.bf16.msra.mxu1 %v2038_v19 }
 0x632   : > { %v1955_v7 = vpop.f32.mrf.mxu1 }
 0x633   : > { %v1500_v20 = vadd.f32 %v1955_v7, %v1434_v18 }
 0x634   : > { %v1491_v9 = vpop.f32.mrf.mxu1 }
 0x635   : > { %v1492_v13 = vadd.f32 %v1491_v9, %v1424_v10 }
 0x636   : > { %v1956_v11 = vpop.f32.mrf.mxu1 }
 0x637   : > { %v1503_v16 = vadd.f32 %v1956_v11, %v1439_v15 }
 0x638   : > { %v1494_v12 = vpop.f32.mrf.mxu1 }
 0x639   : > { %v1495_v14 = vadd.f32 %v1494_v12, %v1429_v8  ;;  %v1507_v21 = vpack.c.bf16 %v1503_v16, %v1500_v20 }
 0x63b   : > { %v1506_v17 = vpack.c.bf16 %v1495_v14, %v1492_v13 }
 0x63d   : > { %1508 = vxpose.xlu0.c.b16.start [1/2] (short) (narrow) %v1506_v17, 16 }
 0x641   : > { %1509 = vxpose.xlu0.c.b16.end [2/2] (short) (narrow) %v1507_v21, 16 }
 0x69f   : > { %v1516_v22 = vpop.trf.xlu0 }
 0x6a0   : > { %v1524_v24 = vunpack.c.l.bf16 %v1516_v22 }
 0x6a2   : > { %v2448_v26 = vadd.f32 %v1524_v24, %v2281_v0  ;;  %v2034_v0 = vld [vmem:[%s2551_s14] sm:$0xff]  }
 0x6a3   : > { %1960 = vmatpush3.bf16.msra.mxu0 %v2034_v0 }
 0x6a4   : > { %v1528_v27 = vsel %vm592_vm0, %v2448_v26, 0.0 }
 0x6a5   : > { %1529 = vadd.xlane.f32.xlu1 %v1528_v27 }
 0x72e   : > { %v1530_v29 = vpop.xlane.xlu1 %1529 }
 0x72f   : > { %v1531_v30 = vmul.f32 0.03125, %v1530_v29 }
 0x731   : > { %v1532_v31 = vsub.f32 %v2448_v26, %v1531_v30 }
 0x733   : > { %v1533_v32 = vmul.f32 %v1532_v31, %v1532_v31  ;;  %v1551_v46 = vmul.f32 %v1830_v45, %v1532_v31 }
 0x735   : > { %v1534_v33 = vsel %vm592_vm0, %v1533_v32, 0.0 }
 0x736   : > { %1535 = vadd.xlane.f32.xlu0 %v1534_v33 }
 0x7bf   : > { %v1536_v38 = vpop.xlane.xlu0 %1535 }
 0x7c0   : > { %v1537_v39 = vmul.f32 0.032258064, %v1536_v38 }
 0x7c2   : > { %2059 = vrsqrt.f32 %v1537_v39  ;;  %vm1540_vm7 = vcmp.eq.f32.partialorder %v1537_v39, inf  ;;  %v1543_v42 = vand.u32 2147483648, %v1537_v39  ;;  %vm1542_vm8 = vcmp.eq.f32.partialorder %v1537_v39, 0.0 }
 0x7cf   : > { %v2060_v40 = vpop.eup %2059 }
 0x7d0   : > { %v1539_v41 = vmul.f32 %v2060_v40, %v1537_v39 }
 0x7d2   : > { %v1541_v43 = vsel %vm1540_vm7, %v1537_v39, %v1539_v41 }
 0x7d3   : > { %v1544_v23 = vsel %vm1542_vm8, %v1543_v42, %v1541_v43 }
 0x7d4   : > { %v1552_v44 = vadd.f32 1e-06, %v1544_v23 }
 0x7d6   : > { %2061 = vrcp.f32 %v1552_v44 }
 0x7e3   : > { %v2062_v47 = vpop.eup %2061 }
 0x7e4   : > { %v1554_v28 = vmul.f32 %v2062_v47, %v1551_v46 }
 0x7e6   : > { %v1561_v49 = vadd.f32 %v1831_v48, %v1554_v28 }
 0x7e8   : > { %v1562_v50 = vpack.c.bf16 %v1561_v49, %v1561_v49 }
 0x7ea   : > { %1962 = vmatmul.mubr.msk.bf16.vlgmr.msra.gmra.mxu0 %vm592_vm0, %v1562_v50 }
 0x8aa   : > { %v1623_v53 = vpop.f32.mrf.mxu0 }
 0x8ab   : > { %v1624_v54 = vadd.f32 %v1832_v52, %v1623_v53 }
 0x8ac   : > { %v1963_v25 = vpop.f32.mrf.mxu0 }
 0x8ad   : > { %v1629_v55 = vmax.f32 %v1624_v54, 0.0 }
 0x8ae   : > { %v1626_v56 = vpop.f32.mrf.mxu0 }
 0x8af   : > { %v1630_v57 = vpack.c.bf16 %v1629_v55, %v1629_v55 }
 0x8b0   : > { %v1964_v58 = vpop.f32.mrf.mxu0 }
 0x8b1   : > { %1974 = vmatmul.mubr.msk.bf16.vlgmr.msra.gmra.mxu1 %vm1670_vm9, %v1630_v57 }
 0x971   : > { %v1708_v59 = vpop.f32.mrf.mxu1 }
 0x972   : > { %v1709_v60 = vadd.f32 %v1836_v36, %v1708_v59 }
 0x973   : > { %v1975_v61 = vpop.f32.mrf.mxu1 }
 0x974   : > { %v1714_v62 = vadd.f32 %v1709_v60, %v2448_v26 }
 0x975   : > { %v1711_v63 = vpop.f32.mrf.mxu1 }
 0x976   : > { %1715 = vst.msk [vmem:[%s577_s1] sm:$0xff] %vm592_vm0, %v1714_v62 }
 0x977   : > { %v1976_v1 = vpop.f32.mrf.mxu1 }
 0x978   : > { %2076 = shalt.err (!%p2073_p3)
}
 0x979   : > { %s2077_s20 = scalar_lea.hbm %s2495_s22, 128  ;;  %s2081_s21 = scalar_lea.hbm %s2555_s18, 256 }
 0x97a   : > { %p2078_p4 = scmp.ne.s32.totalorder %s2495_s22, %s2077_s20  ;;  %p2082_p9 = scmp.lt.s32.totalorder %s2495_s22, %s2555_s18 }
 0x97b   : > { %p2083_p10 = scmp.lt.s32.totalorder %s2081_s21, %s2077_s20 }
 0x97c   : > { %p2079_p7 = pnand %p2078_p4, %p2263_p5 }
 0x97d   : > { %p2084_p11 = por %p2083_p10, %p2082_p9 }
 0x97e   : > { %p2080_p8 = pneg %p2079_p7 }
 0x980   : > { %p2085_p12 = pnand %p2084_p11, %p2080_p8 }
 0x982   : > { %2088 = shalt.err (!%p2085_p12)
}
 0x983   : > { %1980 = dma.vmem_to_hbm [thread:$0]  (%p2263_p5), %s2497_s24, 128, %s2495_s22, %s1717_s0  }
 0x984 PF: > { %s2574_s27 = sld [smem:[#allocation5_spill]]  ;;  %p1986_p13 = scmp.ge.s32.totalorder %s2123_s30, 2 }
 0x986   : > { %p1983_p0 = pnand %p1986_p13, %p2267_p6 }
 0x988   : > { %p1984_p1 = pneg %p1983_p0 }
 0x98a   : > { %s1742_s19 = sand.u32 1, %s2574_s27  }
 0x98b   : > { %s1743_s23 = scalar_lea.sflag [#allocation3], %s1742_s19 }
 0x98c   : > { %2106 = dma.done.wait (%p1984_p1), %s1743_s23, 128  }
 0x98d   : > { %2108 = vsyncadd (%p1984_p1), %s1743_s23, 4294967168  ;;  %s2576_s30 = sld [smem:[#allocation7_spill]]  ;;  %s2579_s27 = smov %s2115_s28 }
 0x98e   : > { %s2577_s20 = sld [smem:[#allocation6_spill]] }
 0x98f   : > { %s2578_s29 = sld [smem:[#allocation8_spill]] }
 0x993   : > { %p28_p2 = scmp.ge.s32.totalorder %s2576_s30, 4  }
 0x994   : > { %s2580_s28 = smov %s2577_s20 }
 0x995   :  { %30 = sbr.rel (!%p28_p2) target bundleno = 7 (0x7), region = 130 }
 0x99a   :  { %1748 = vsyncpa [#allocation3], 1 }
 0x99b   :  { %1750 = vsyncpa [#allocation3 + $0x1], 1 }

</bundles_post_ra>
